<compile_context>
chip_gen: v7x
topology: tpu7x:2x2x1
jax: 0.10.0
libtpu: 0.0.40
codegen_flags: <defaults>
</compile_context>

<pallas_src>
import functools
import math

import jax
import jax.numpy as jnp
from jax.experimental import pallas as pl
from jax.experimental.pallas import tpu as pltpu


def _mha_kernel(q_ref, k_ref, wqt_ref, wkt_ref, wvt_ref, o_ref, *, num_heads):
    # Block views (one batch-block of B_blk elements per grid step):
    #   q_ref  : (B_blk, T_q, query_dim)
    #   k_ref  : (B_blk, T_k, key_dim)
    #   wqt_ref: (query_dim, num_units)   -- Wq^T, pre-scaled by 1/sqrt(key_dim)
    #   wkt_ref: (key_dim, num_units)     -- Wk^T
    #   wvt_ref: (key_dim, num_units)     -- Wv^T
    #   o_ref  : (B_blk, T_q, num_units)
    b_blk, t_q, q_dim = q_ref.shape
    _, t_k, k_dim = k_ref.shape
    num_units = wqt_ref.shape[1]
    head_dim = num_units // num_heads

    # Slab projections across the whole batch block: M = B_blk*T rows per MXU
    # matmul.  Operands kept in their native dtype; f32 accumulation.
    q2 = q_ref[...].reshape(b_blk * t_q, q_dim)
    k2 = k_ref[...].reshape(b_blk * t_k, k_dim)
    qs = jnp.dot(q2, wqt_ref[...], preferred_element_type=jnp.float32)  # [B*T_q, U] (scaled)
    ks = jnp.dot(k2, wkt_ref[...], preferred_element_type=jnp.float32)  # [B*T_k, U]
    vs = jnp.dot(k2, wvt_ref[...], preferred_element_type=jnp.float32)  # [B*T_k, U]

    qs = qs.reshape(b_blk, t_q, num_units)
    ks = ks.reshape(b_blk, t_k, num_units)
    vs = vs.reshape(b_blk, t_k, num_units)

    # Per-head attention; the batch-block dim rides inside each einsum so there
    # is no unrolled Python loop over B_blk (bounded register pressure).
    for h in range(num_heads):  # num_heads is small and static -> unroll in Python
        lo = h * head_dim
        hi = lo + head_dim
        qh = qs[:, :, lo:hi]                                   # [B_blk, T_q, hd]
        kh = ks[:, :, lo:hi]                                   # [B_blk, T_k, hd]
        vh = vs[:, :, lo:hi]                                   # [B_blk, T_k, hd]

        # scores = qh @ kh^T (scale already folded into Wq^T).
        s = jnp.einsum("bqd,bkd->bqk", qh, kh,
                       preferred_element_type=jnp.float32)     # [B_blk, T_q, T_k]

        # Numerically-stable softmax over the key axis (f32), matches F.softmax(dim=3).
        s = s - jnp.max(s, axis=-1, keepdims=True)
        p = jnp.exp(s)
        # approx=True would move the divide to the otherwise-idle EUP; kept exact
        # here to preserve the 1e-5 parity check (negligible at T_k=8).
        p = p * pl.reciprocal(jnp.sum(p, axis=-1, keepdims=True), approx=False)

        oh = jnp.einsum("bqk,bkd->bqd", p, vh,
                        preferred_element_type=jnp.float32)    # [B_blk, T_q, hd]
        # Write the head directly into its lane offset of the output block; the
        # whole block is DMA'd back once per grid step by the pipeline.
        o_ref[:, :, lo:hi] = oh.astype(o_ref.dtype)


def multi_head_attention(query, key, wq, wk, wv, *, num_heads, key_dim,
                         block_batch=None):
    """query: [N, T_q, query_dim], key: [N, T_k, key_dim].
    wq: [num_units, query_dim], wk/wv: [num_units, key_dim]  (torch Linear weights).
    Returns [N, T_q, num_units]."""
    N, T_q, query_dim = query.shape
    Nk, T_k, key_dim_in = key.shape
    num_units = wq.shape[0]
    assert Nk == N and key_dim_in == key_dim
    assert num_units % num_heads == 0

    # Fold the 1/sqrt(key_dim) score scale into the query projection (exact
    # linear-map identity) and pre-transpose weights for right-multiply.
    # TODO(synk): if weights are static params, hoist these one-time transforms
    # out of the per-call wrapper.
    scale = 1.0 / math.sqrt(float(key_dim))
    wq_t = (wq.T * scale).astype(query.dtype)   # [Dq, U]
    wk_t = wk.T.astype(key.dtype)               # [Dk, U]
    wv_t = wv.T.astype(key.dtype)               # [Dk, U]

    # Batch-block size: target ~256 projection rows (fills a v6e/v7x MXU pass;
    # >=128 is already good on v5e), but keep >=2 grid steps when N allows so
    # v7x's two TensorCores both get work via the "parallel" batch axis.
    if block_batch is None:
        block_batch = max(1, min(pl.cdiv(256, T_q), max(1, N // 2)))
    n_blocks = pl.cdiv(N, block_batch)
    n_pad = n_blocks * block_batch
    if n_pad != N:
        # Zero padding is safe: zero scores -> uniform softmax -> zero output,
        # and the padded rows are sliced off below.
        query = jnp.pad(query, ((0, n_pad - N), (0, 0), (0, 0)))
        key = jnp.pad(key, ((0, n_pad - N), (0, 0), (0, 0)))

    kernel = functools.partial(_mha_kernel, num_heads=num_heads)

    # TODO(synk): for long sequences, tile T_q/T_k with an online-softmax
    # accumulator (size tiles against v7x's 64 MiB VMEM / 32 MiB scoped default
    # and set vmem_limit_bytes explicitly) instead of materializing the full
    # [T_q, T_k] score matrix.
    out = pl.pallas_call(
        kernel,
        out_shape=jax.ShapeDtypeStruct((n_pad, T_q, num_units), query.dtype),
        grid_spec=pltpu.PrefetchScalarGridSpec(
            num_scalar_prefetch=0,
            grid=(n_blocks,),
            in_specs=[
                pl.BlockSpec((block_batch, T_q, query_dim), lambda b: (b, 0, 0)),
                pl.BlockSpec((block_batch, T_k, key_dim), lambda b: (b, 0, 0)),
                pl.BlockSpec((query_dim, num_units), lambda b: (0, 0)),
                pl.BlockSpec((key_dim, num_units), lambda b: (0, 0)),
                pl.BlockSpec((key_dim, num_units), lambda b: (0, 0)),
            ],
            out_specs=pl.BlockSpec((block_batch, T_q, num_units),
                                   lambda b: (b, 0, 0)),
        ),
        compiler_params=pltpu.CompilerParams(
            dimension_semantics=("parallel",)),
    )(query, key, wq_t, wk_t, wv_t)

    return out[:N] if n_pad != N else out


def _reference(query, key, wq, wk, wv, *, num_heads, key_dim):
    N, T_q, _ = query.shape
    num_units = wq.shape[0]
    qs = query @ wq.T
    ks = key @ wk.T
    vs = key @ wv.T
    qs = jnp.stack(jnp.split(qs, num_heads, axis=2), axis=0)
    ks = jnp.stack(jnp.split(ks, num_heads, axis=2), axis=0)
    vs = jnp.stack(jnp.split(vs, num_heads, axis=2), axis=0)
    scores = jnp.einsum("hnqd,hnkd->hnqk", qs, ks) / math.sqrt(float(key_dim))
    scores = jax.nn.softmax(scores, axis=3)
    out = jnp.einsum("hnqk,hnkd->hnqd", scores, vs)
    return out.transpose(1, 2, 0, 3).reshape(N, T_q, num_units)


if __name__ == "__main__":
    # Small shapes consistent with the module's forward.
    N, T_q, T_k = 2, 8, 8
    query_dim, key_dim = 32, 32
    num_units, num_heads = 32, 4

    k0 = jax.random.PRNGKey(0)
    kq, kk, k1, k2, k3 = jax.random.split(k0, 5)
    query = jax.random.normal(kq, (N, T_q, query_dim), dtype=jnp.float32)
    key = jax.random.normal(kk, (N, T_k, key_dim), dtype=jnp.float32)

    # Deterministic synthetic Linear weights (torch Linear weight shape: [out, in]).
    wq = jax.random.normal(k1, (num_units, query_dim), dtype=jnp.float32) * 0.1
    wk = jax.random.normal(k2, (num_units, key_dim), dtype=jnp.float32) * 0.1
    wv = jax.random.normal(k3, (num_units, key_dim), dtype=jnp.float32) * 0.1

    out = multi_head_attention(query, key, wq, wk, wv,
                               num_heads=num_heads, key_dim=key_dim)
    out = jax.block_until_ready(out)
    ref = _reference(query, key, wq, wk, wv, num_heads=num_heads, key_dim=key_dim)
    assert out.shape == (N, T_q, num_units)
    assert jnp.allclose(out, ref, atol=1e-5, rtol=1e-5), "mismatch vs reference"

    # Second small check: batch not divisible by the block size (exercises the
    # batch-blocking + padding path; block_batch=2 over N=5 -> pad to 6, grid=3).
    N2 = 5
    kq2, kk2 = jax.random.split(jax.random.PRNGKey(7), 2)
    query2 = jax.random.normal(kq2, (N2, T_q, query_dim), dtype=jnp.float32)
    key2 = jax.random.normal(kk2, (N2, T_k, key_dim), dtype=jnp.float32)
    out2 = multi_head_attention(query2, key2, wq, wk, wv,
                                num_heads=num_heads, key_dim=key_dim,
                                block_batch=2)
    out2 = jax.block_until_ready(out2)
    ref2 = _reference(query2, key2, wq, wk, wv, num_heads=num_heads, key_dim=key_dim)
    assert out2.shape == (N2, T_q, num_units)
    assert jnp.allclose(out2, ref2, atol=1e-5, rtol=1e-5), "mismatch vs reference (blocked)"

    print("KERNEL_OK")
</pallas_src>

<mosaic_0001>
module attributes {stable_mosaic.version = 11 : i64} {
  func.func @_mha_kernel(%arg0: i32, %arg1: memref<1x8x32xf32, #tpu.memory_space<vmem>>, %arg2: memref<1x8x32xf32, #tpu.memory_space<vmem>>, %arg3: memref<32x32xf32, #tpu.memory_space<vmem>>, %arg4: memref<32x32xf32, #tpu.memory_space<vmem>>, %arg5: memref<32x32xf32, #tpu.memory_space<vmem>>, %arg6: memref<1x8x32xf32, #tpu.memory_space<vmem>>) attributes {dimension_semantics = [#tpu.dimension_semantics<parallel>], iteration_bounds = array<i64: 2>, scalar_prefetch = 0 : i64, scratch_operands = 0 : i64, tpu.core_type = #tpu.core_type<tc>, window_params = [{transform_indices = @transform_0, window_bounds = array<i64: 1, 8, 32>}, {transform_indices = @transform_1, window_bounds = array<i64: 1, 8, 32>}, {pipeline_mode = #tpu.pipeline_mode<synchronous>, transform_indices = @transform_2, window_bounds = array<i64: 32, 32>}, {pipeline_mode = #tpu.pipeline_mode<synchronous>, transform_indices = @transform_3, window_bounds = array<i64: 32, 32>}, {pipeline_mode = #tpu.pipeline_mode<synchronous>, transform_indices = @transform_4, window_bounds = array<i64: 32, 32>}, {transform_indices = @transform_5, window_bounds = array<i64: 1, 8, 32>}]} {
    %c0 = arith.constant 0 : index
    %c0_0 = arith.constant 0 : index
    %c0_1 = arith.constant 0 : index
    %0 = vector.load %arg1[%c0, %c0_0, %c0_1] : memref<1x8x32xf32, #tpu.memory_space<vmem>>, vector<1x8x32xf32>
    %1 = vector.shape_cast %0 : vector<1x8x32xf32> to vector<8x32xf32>
    %c0_2 = arith.constant 0 : index
    %c0_3 = arith.constant 0 : index
    %c0_4 = arith.constant 0 : index
    %2 = vector.load %arg2[%c0_2, %c0_3, %c0_4] : memref<1x8x32xf32, #tpu.memory_space<vmem>>, vector<1x8x32xf32>
    %3 = vector.shape_cast %2 : vector<1x8x32xf32> to vector<8x32xf32>
    %c0_5 = arith.constant 0 : index
    %c0_6 = arith.constant 0 : index
    %4 = vector.load %arg3[%c0_5, %c0_6] : memref<32x32xf32, #tpu.memory_space<vmem>>, vector<32x32xf32>
    %cst = arith.constant dense<0.000000e+00> : vector<8x32xf32>
    %5 = tpu.matmul %1, %4, %cst {dimension_numbers = #tpu.dot_dimension_numbers<[1], [0], [0], [1], [0, 0, 1, 1], [], []>} : vector<8x32xf32>, vector<32x32xf32>, vector<8x32xf32> -> vector<8x32xf32>
    %c0_7 = arith.constant 0 : index
    %c0_8 = arith.constant 0 : index
    %6 = vector.load %arg4[%c0_7, %c0_8] : memref<32x32xf32, #tpu.memory_space<vmem>>, vector<32x32xf32>
    %cst_9 = arith.constant dense<0.000000e+00> : vector<8x32xf32>
    %7 = tpu.matmul %3, %6, %cst_9 {dimension_numbers = #tpu.dot_dimension_numbers<[1], [0], [0], [1], [0, 0, 1, 1], [], []>} : vector<8x32xf32>, vector<32x32xf32>, vector<8x32xf32> -> vector<8x32xf32>
    %c0_10 = arith.constant 0 : index
    %c0_11 = arith.constant 0 : index
    %8 = vector.load %arg5[%c0_10, %c0_11] : memref<32x32xf32, #tpu.memory_space<vmem>>, vector<32x32xf32>
    %cst_12 = arith.constant dense<0.000000e+00> : vector<8x32xf32>
    %9 = tpu.matmul %3, %8, %cst_12 {dimension_numbers = #tpu.dot_dimension_numbers<[1], [0], [0], [1], [0, 0, 1, 1], [], []>} : vector<8x32xf32>, vector<32x32xf32>, vector<8x32xf32> -> vector<8x32xf32>
    %10 = vector.shape_cast %5 : vector<8x32xf32> to vector<1x8x32xf32>
    %11 = vector.shape_cast %7 : vector<8x32xf32> to vector<1x8x32xf32>
    %12 = vector.shape_cast %9 : vector<8x32xf32> to vector<1x8x32xf32>
    %13 = vector.extract_strided_slice %10 {offsets = [0, 0, 0], sizes = [1, 8, 8], strides = [1, 1, 1]} : vector<1x8x32xf32> to vector<1x8x8xf32>
    %14 = vector.extract_strided_slice %11 {offsets = [0, 0, 0], sizes = [1, 8, 8], strides = [1, 1, 1]} : vector<1x8x32xf32> to vector<1x8x8xf32>
    %15 = vector.extract_strided_slice %12 {offsets = [0, 0, 0], sizes = [1, 8, 8], strides = [1, 1, 1]} : vector<1x8x32xf32> to vector<1x8x8xf32>
    "tpu.trace_start"() <{level = 10 : i32, message = "bqd,bkd->bqk"}> : () -> ()
    %cst_13 = arith.constant dense<0.000000e+00> : vector<1x8x8xf32>
    %16 = tpu.matmul %13, %14, %cst_13 {dimension_numbers = #tpu.dot_dimension_numbers<[2], [2], [1], [1], [0, 0, 0, 1, 1, 1], [0], [0]>} : vector<1x8x8xf32>, vector<1x8x8xf32>, vector<1x8x8xf32> -> vector<1x8x8xf32>
    "tpu.trace_stop"() : () -> ()
    %cst_14 = arith.constant dense<0xFF800000> : vector<1x8xf32>
    %17 = vector.multi_reduction <maximumf>, %16, %cst_14 [2] : vector<1x8x8xf32> to vector<1x8xf32>
    %18 = vector.shape_cast %17 : vector<1x8xf32> to vector<1x8x1xf32>
    %19 = vector.broadcast %18 : vector<1x8x1xf32> to vector<1x8x8xf32>
    %20 = arith.subf %16, %19 : vector<1x8x8xf32>
    %21 = math.exp %20 : vector<1x8x8xf32>
    %cst_15 = arith.constant dense<0.000000e+00> : vector<1x8xf32>
    %22 = vector.multi_reduction <add>, %21, %cst_15 [2] : vector<1x8x8xf32> to vector<1x8xf32>
    %23 = vector.shape_cast %22 : vector<1x8xf32> to vector<1x8x1xf32>
    %24 = tpu.reciprocal %23 : vector<1x8x1xf32> -> vector<1x8x1xf32>
    %25 = vector.broadcast %24 : vector<1x8x1xf32> to vector<1x8x8xf32>
    %26 = arith.mulf %21, %25 : vector<1x8x8xf32>
    "tpu.trace_start"() <{level = 10 : i32, message = "bqk,bkd->bqd"}> : () -> ()
    %cst_16 = arith.constant dense<0.000000e+00> : vector<1x8x8xf32>
    %27 = tpu.matmul %26, %15, %cst_16 {dimension_numbers = #tpu.dot_dimension_numbers<[2], [1], [1], [2], [0, 0, 0, 1, 1, 2], [0], [0]>} : vector<1x8x8xf32>, vector<1x8x8xf32>, vector<1x8x8xf32> -> vector<1x8x8xf32>
    "tpu.trace_stop"() : () -> ()
    %c0_17 = arith.constant 0 : index
    %c0_18 = arith.constant 0 : index
    %c0_19 = arith.constant 0 : index
    %28 = vector.load %arg6[%c0_17, %c0_18, %c0_19] : memref<1x8x32xf32, #tpu.memory_space<vmem>>, vector<1x8x8xf32>
    tpu.vector_store %arg6[%c0_17, %c0_18, %c0_19], %27 {strides = array<i32>} : memref<1x8x32xf32, #tpu.memory_space<vmem>>, vector<1x8x8xf32>,
    %29 = vector.extract_strided_slice %10 {offsets = [0, 0, 8], sizes = [1, 8, 8], strides = [1, 1, 1]} : vector<1x8x32xf32> to vector<1x8x8xf32>
    %30 = vector.extract_strided_slice %11 {offsets = [0, 0, 8], sizes = [1, 8, 8], strides = [1, 1, 1]} : vector<1x8x32xf32> to vector<1x8x8xf32>
    %31 = vector.extract_strided_slice %12 {offsets = [0, 0, 8], sizes = [1, 8, 8], strides = [1, 1, 1]} : vector<1x8x32xf32> to vector<1x8x8xf32>
    "tpu.trace_start"() <{level = 10 : i32, message = "bqd,bkd->bqk"}> : () -> ()
    %cst_20 = arith.constant dense<0.000000e+00> : vector<1x8x8xf32>
    %32 = tpu.matmul %29, %30, %cst_20 {dimension_numbers = #tpu.dot_dimension_numbers<[2], [2], [1], [1], [0, 0, 0, 1, 1, 1], [0], [0]>} : vector<1x8x8xf32>, vector<1x8x8xf32>, vector<1x8x8xf32> -> vector<1x8x8xf32>
    "tpu.trace_stop"() : () -> ()
    %cst_21 = arith.constant dense<0xFF800000> : vector<1x8xf32>
    %33 = vector.multi_reduction <maximumf>, %32, %cst_21 [2] : vector<1x8x8xf32> to vector<1x8xf32>
    %34 = vector.shape_cast %33 : vector<1x8xf32> to vector<1x8x1xf32>
    %35 = vector.broadcast %34 : vector<1x8x1xf32> to vector<1x8x8xf32>
    %36 = arith.subf %32, %35 : vector<1x8x8xf32>
    %37 = math.exp %36 : vector<1x8x8xf32>
    %cst_22 = arith.constant dense<0.000000e+00> : vector<1x8xf32>
    %38 = vector.multi_reduction <add>, %37, %cst_22 [2] : vector<1x8x8xf32> to vector<1x8xf32>
    %39 = vector.shape_cast %38 : vector<1x8xf32> to vector<1x8x1xf32>
    %40 = tpu.reciprocal %39 : vector<1x8x1xf32> -> vector<1x8x1xf32>
    %41 = vector.broadcast %40 : vector<1x8x1xf32> to vector<1x8x8xf32>
    %42 = arith.mulf %37, %41 : vector<1x8x8xf32>
    "tpu.trace_start"() <{level = 10 : i32, message = "bqk,bkd->bqd"}> : () -> ()
    %cst_23 = arith.constant dense<0.000000e+00> : vector<1x8x8xf32>
    %43 = tpu.matmul %42, %31, %cst_23 {dimension_numbers = #tpu.dot_dimension_numbers<[2], [1], [1], [2], [0, 0, 0, 1, 1, 2], [0], [0]>} : vector<1x8x8xf32>, vector<1x8x8xf32>, vector<1x8x8xf32> -> vector<1x8x8xf32>
    "tpu.trace_stop"() : () -> ()
    %c0_24 = arith.constant 0 : index
    %c0_25 = arith.constant 0 : index
    %c8 = arith.constant 8 : index
    %44 = vector.load %arg6[%c0_24, %c0_25, %c8] : memref<1x8x32xf32, #tpu.memory_space<vmem>>, vector<1x8x8xf32>
    tpu.vector_store %arg6[%c0_24, %c0_25, %c8], %43 {strides = array<i32>} : memref<1x8x32xf32, #tpu.memory_space<vmem>>, vector<1x8x8xf32>,
    %45 = vector.extract_strided_slice %10 {offsets = [0, 0, 16], sizes = [1, 8, 8], strides = [1, 1, 1]} : vector<1x8x32xf32> to vector<1x8x8xf32>
    %46 = vector.extract_strided_slice %11 {offsets = [0, 0, 16], sizes = [1, 8, 8], strides = [1, 1, 1]} : vector<1x8x32xf32> to vector<1x8x8xf32>
    %47 = vector.extract_strided_slice %12 {offsets = [0, 0, 16], sizes = [1, 8, 8], strides = [1, 1, 1]} : vector<1x8x32xf32> to vector<1x8x8xf32>
    "tpu.trace_start"() <{level = 10 : i32, message = "bqd,bkd->bqk"}> : () -> ()
    %cst_26 = arith.constant dense<0.000000e+00> : vector<1x8x8xf32>
    %48 = tpu.matmul %45, %46, %cst_26 {dimension_numbers = #tpu.dot_dimension_numbers<[2], [2], [1], [1], [0, 0, 0, 1, 1, 1], [0], [0]>} : vector<1x8x8xf32>, vector<1x8x8xf32>, vector<1x8x8xf32> -> vector<1x8x8xf32>
    "tpu.trace_stop"() : () -> ()
    %cst_27 = arith.constant dense<0xFF800000> : vector<1x8xf32>
    %49 = vector.multi_reduction <maximumf>, %48, %cst_27 [2] : vector<1x8x8xf32> to vector<1x8xf32>
    %50 = vector.shape_cast %49 : vector<1x8xf32> to vector<1x8x1xf32>
    %51 = vector.broadcast %50 : vector<1x8x1xf32> to vector<1x8x8xf32>
    %52 = arith.subf %48, %51 : vector<1x8x8xf32>
    %53 = math.exp %52 : vector<1x8x8xf32>
    %cst_28 = arith.constant dense<0.000000e+00> : vector<1x8xf32>
    %54 = vector.multi_reduction <add>, %53, %cst_28 [2] : vector<1x8x8xf32> to vector<1x8xf32>
    %55 = vector.shape_cast %54 : vector<1x8xf32> to vector<1x8x1xf32>
    %56 = tpu.reciprocal %55 : vector<1x8x1xf32> -> vector<1x8x1xf32>
    %57 = vector.broadcast %56 : vector<1x8x1xf32> to vector<1x8x8xf32>
    %58 = arith.mulf %53, %57 : vector<1x8x8xf32>
    "tpu.trace_start"() <{level = 10 : i32, message = "bqk,bkd->bqd"}> : () -> ()
    %cst_29 = arith.constant dense<0.000000e+00> : vector<1x8x8xf32>
    %59 = tpu.matmul %58, %47, %cst_29 {dimension_numbers = #tpu.dot_dimension_numbers<[2], [1], [1], [2], [0, 0, 0, 1, 1, 2], [0], [0]>} : vector<1x8x8xf32>, vector<1x8x8xf32>, vector<1x8x8xf32> -> vector<1x8x8xf32>
    "tpu.trace_stop"() : () -> ()
    %c0_30 = arith.constant 0 : index
    %c0_31 = arith.constant 0 : index
    %c16 = arith.constant 16 : index
    %60 = vector.load %arg6[%c0_30, %c0_31, %c16] : memref<1x8x32xf32, #tpu.memory_space<vmem>>, vector<1x8x8xf32>
    tpu.vector_store %arg6[%c0_30, %c0_31, %c16], %59 {strides = array<i32>} : memref<1x8x32xf32, #tpu.memory_space<vmem>>, vector<1x8x8xf32>,
    %61 = vector.extract_strided_slice %10 {offsets = [0, 0, 24], sizes = [1, 8, 8], strides = [1, 1, 1]} : vector<1x8x32xf32> to vector<1x8x8xf32>
    %62 = vector.extract_strided_slice %11 {offsets = [0, 0, 24], sizes = [1, 8, 8], strides = [1, 1, 1]} : vector<1x8x32xf32> to vector<1x8x8xf32>
    %63 = vector.extract_strided_slice %12 {offsets = [0, 0, 24], sizes = [1, 8, 8], strides = [1, 1, 1]} : vector<1x8x32xf32> to vector<1x8x8xf32>
    "tpu.trace_start"() <{level = 10 : i32, message = "bqd,bkd->bqk"}> : () -> ()
    %cst_32 = arith.constant dense<0.000000e+00> : vector<1x8x8xf32>
    %64 = tpu.matmul %61, %62, %cst_32 {dimension_numbers = #tpu.dot_dimension_numbers<[2], [2], [1], [1], [0, 0, 0, 1, 1, 1], [0], [0]>} : vector<1x8x8xf32>, vector<1x8x8xf32>, vector<1x8x8xf32> -> vector<1x8x8xf32>
    "tpu.trace_stop"() : () -> ()
    %cst_33 = arith.constant dense<0xFF800000> : vector<1x8xf32>
    %65 = vector.multi_reduction <maximumf>, %64, %cst_33 [2] : vector<1x8x8xf32> to vector<1x8xf32>
    %66 = vector.shape_cast %65 : vector<1x8xf32> to vector<1x8x1xf32>
    %67 = vector.broadcast %66 : vector<1x8x1xf32> to vector<1x8x8xf32>
    %68 = arith.subf %64, %67 : vector<1x8x8xf32>
    %69 = math.exp %68 : vector<1x8x8xf32>
    %cst_34 = arith.constant dense<0.000000e+00> : vector<1x8xf32>
    %70 = vector.multi_reduction <add>, %69, %cst_34 [2] : vector<1x8x8xf32> to vector<1x8xf32>
    %71 = vector.shape_cast %70 : vector<1x8xf32> to vector<1x8x1xf32>
    %72 = tpu.reciprocal %71 : vector<1x8x1xf32> -> vector<1x8x1xf32>
    %73 = vector.broadcast %72 : vector<1x8x1xf32> to vector<1x8x8xf32>
    %74 = arith.mulf %69, %73 : vector<1x8x8xf32>
    "tpu.trace_start"() <{level = 10 : i32, message = "bqk,bkd->bqd"}> : () -> ()
    %cst_35 = arith.constant dense<0.000000e+00> : vector<1x8x8xf32>
    %75 = tpu.matmul %74, %63, %cst_35 {dimension_numbers = #tpu.dot_dimension_numbers<[2], [1], [1], [2], [0, 0, 0, 1, 1, 2], [0], [0]>} : vector<1x8x8xf32>, vector<1x8x8xf32>, vector<1x8x8xf32> -> vector<1x8x8xf32>
    "tpu.trace_stop"() : () -> ()
    %c0_36 = arith.constant 0 : index
    %c0_37 = arith.constant 0 : index
    %c24 = arith.constant 24 : index
    %76 = vector.load %arg6[%c0_36, %c0_37, %c24] : memref<1x8x32xf32, #tpu.memory_space<vmem>>, vector<1x8x8xf32>
    tpu.vector_store %arg6[%c0_36, %c0_37, %c24], %75 {strides = array<i32>} : memref<1x8x32xf32, #tpu.memory_space<vmem>>, vector<1x8x8xf32>,
    return
  }
  func.func @transform_0(%arg0: i32) -> (i32, i32, i32) {
    %c0_i32 = arith.constant 0 : i32
    %c0_i32_0 = arith.constant 0 : i32
    %c0_i32_1 = arith.constant 0 : i32
    return %arg0, %c0_i32, %c0_i32_0 : i32, i32, i32
  }
  func.func @transform_1(%arg0: i32) -> (i32, i32, i32) {
    %c0_i32 = arith.constant 0 : i32
    %c0_i32_0 = arith.constant 0 : i32
    %c0_i32_1 = arith.constant 0 : i32
    return %arg0, %c0_i32, %c0_i32_0 : i32, i32, i32
  }
  func.func @transform_2(%arg0: i32) -> (i32, i32) {
    %c0_i32 = arith.constant 0 : i32
    %c0_i32_0 = arith.constant 0 : i32
    %c0_i32_1 = arith.constant 0 : i32
    return %c0_i32, %c0_i32_0 : i32, i32
  }
  func.func @transform_3(%arg0: i32) -> (i32, i32) {
    %c0_i32 = arith.constant 0 : i32
    %c0_i32_0 = arith.constant 0 : i32
    %c0_i32_1 = arith.constant 0 : i32
    return %c0_i32, %c0_i32_0 : i32, i32
  }
  func.func @transform_4(%arg0: i32) -> (i32, i32) {
    %c0_i32 = arith.constant 0 : i32
    %c0_i32_0 = arith.constant 0 : i32
    %c0_i32_1 = arith.constant 0 : i32
    return %c0_i32, %c0_i32_0 : i32, i32
  }
  func.func @transform_5(%arg0: i32) -> (i32, i32, i32) {
    %c0_i32 = arith.constant 0 : i32
    %c0_i32_0 = arith.constant 0 : i32
    %c0_i32_1 = arith.constant 0 : i32
    return %arg0, %c0_i32, %c0_i32_0 : i32, i32, i32
  }
}

</mosaic_0001>

<bundles_post_ra>
// kernel: tpu_custom_call.1
= control target key start
LH: loop header
LB: loop body
LE: loop exit
PB: predicated region body
PF: predicated region fallthrough
CT: control target
= control target key end

     0   :  { %s2275_s0 = inlined_call_operand.hbm [shape: f32[2,8,32], index: 0, kind: input, shape index: {}]   ;;  %s2276_s1 = inlined_call_operand.hbm [shape: f32[2,8,32], index: 1, kind: input, shape index: {}]   ;;  %s2277_s2 = inlined_call_operand.hbm [shape: f32[32,32], index: 2, kind: input, shape index: {}]   ;;  %s2278_s3 = inlined_call_operand.hbm [shape: f32[32,32], index: 3, kind: input, shape index: {}]   ;;  %s2279_s4 = inlined_call_operand.hbm [shape: f32[32,32], index: 4, kind: input, shape index: {}]   ;;  %s2280_s5 = inlined_call_operand.hbm [shape: f32[2,8,32], index: 5, kind: output, shape index: {}]  }
   0x1   :  { %2285 = sst [smem:[#allocation17_spill]] %s2277_s2 }
   0x2   :  { %2286 = sst [smem:[#allocation18_spill]] %s2278_s3 }
   0x3   :  { %10 = vsyncpa [#allocation3], 0 }
   0x4   :  { %12 = vsyncpa [#allocation3 + $0x1], 0 }
   0x5   :  { %13 = vsyncpa [#allocation6], 0 }
   0x6   :  { %15 = vsyncpa [#allocation6 + $0x1], 0 }
   0x7   :  { %16 = vsyncpa [#allocation9], 0 }
   0x8   :  { %17 = vsyncpa [#allocation4], 0 }
   0x9   :  { %19 = vsyncpa [#allocation4 + $0x1], 0  ;;  %s1900_s18 = smov 0   ;;  %s1902_s19 = smov 0  }
   0xa   :  { %s1904_s20 = smov 0   ;;  %s1906_s21 = smov 0  }
   0xb LB: > { %s1921_s22 = sadd.s32 4294967295, %s1851_s21   ;;  %s1362_s23 = sadd.s32 4294967294, %s1851_s21   ;;  %s1851_s21 = sphi %s1906_s21, %s2309_s21   ;;  %s1847_s20 = sphi %s1904_s20, %s2308_s20   ;;  %s1843_s19 = sphi %s1902_s19, %s2307_s19   ;;  %s1839_s18 = sphi %s1900_s18, %s2306_s18  }
   0xc   : > { %p45_p0 = scmp.ne.s32.totalorder %s1843_s19, %s1839_s18  ;;  %p2281_p1 = scmp.eq.s32.totalorder %s1921_s22, 0 }
   0xd   : > { %p164_p3 = scmp.eq.s32.totalorder %s1362_s23, 1  ;;  %p1363_p5 = scmp.ge.s32.totalorder %s1851_s21, 1 }
   0xe   : > { %p1930_p4 = por %p2281_p1, %p45_p0  ;;  %p171_p7 = scmp.lt.s32.totalorder %s1851_s21, 3 }
   0xf   : > { %p1935_p6 = por %p164_p3, %p45_p0  ;;  %s1853_s27 = smov [#allocation7]  }
  0x10   : > { %s2287_s24 = scalar_select %p1930_p4, 1, 0 }
  0x11   : > { %s2288_s25 = scalar_select %p1935_p6, 1, 0 }
  0x12   : > { %p1940_p8 = pnand %p1363_p5, %p171_p7  ;;  %s183_s28 = sshll.u32 %s1853_s27, 4  ;;  %s1944_s28 = int_to_ptr.vmem [resolvable:$true] %s183_s28 }
  0x13   : > { %s1854_s30 = smov [#allocation8]   ;;  %s1855_s7 = smov [#allocation10]  }
  0x14   : > { %s2289_s26 = scalar_select %p1940_p8, 1, 0 }
  0x15   : > { %p1538_p9 = pneg %p1940_p8  ;;  %s196_s6 = sshll.u32 %s1854_s30, 4  ;;  %s1955_s6 = int_to_ptr.vmem [resolvable:$true] %s196_s6 }
  0x16   : > { %s1957_s8 = sshll.u32 %s1855_s7, 4  ;;  %s2291_s2 = sld [smem:[#allocation17_spill]]  ;;  %s210_s8 = int_to_ptr.vmem [resolvable:$true] %s1957_s8 }
  0x17   : > { %p1951_p11 = pnand %p1538_p9, %p2281_p1 }
  0x19   : > { %p1967_p13 = pneg %p1951_p11 }
  0x1c   : > { %s1629_s11 = scalar_lea.hbm %s2291_s2, 512 }
  0x1d   : > { %p1630_p12 = scmp.ne.s32.totalorder %s2291_s2, %s1629_s11  ;;  %p1636_p5 = scmp.lt.u32.totalorder %s1629_s11, %s2291_s2 }
  0x1f   : > { %p1632_p0 = pnand %p1967_p13, %p1630_p12 }
  0x21   : > { %p1633_p3 = pneg %p1632_p0 }
  0x23   : > { %p1638_p7 = pnand %p1636_p5, %p1633_p3 }
  0x25   : > { %1641 = shalt.err (!%p1638_p7)
}
  0x26   : > { %s1642_s17 = scalar_lea.vmem %s1944_s28, 512  ;;  %p1650_p2 = scmp.lt.s32.totalorder %s1944_s28, %s1944_s28 }
  0x27   : > { %p1643_p9 = scmp.ne.s32.totalorder %s1944_s28, %s1642_s17  ;;  %p1651_p6 = scmp.lt.s32.totalorder %s1642_s17, %s1642_s17 }
  0x29   : > { %p1645_p10 = pnand %p1643_p9, %p1967_p13  ;;  %p1652_p12 = por %p1651_p6, %p1650_p2 }
  0x2b   : > { %p1646_p1 = pneg %p1645_p10 }
  0x2d   : > { %p1653_p0 = pnand %p1652_p12, %p1646_p1 }
  0x2f   : > { %1656 = shalt.err (!%p1653_p0)
}
  0x30   : > { %s1856_s23 = smov 128   ;;  %s1857_s27 = smov 8  }
  0x31   : > { %1541 = dma.hbm_to_vmem [thread:$0]  (!%p1951_p11), %s2291_s2, 512, %s1944_s28, [#allocation6], %s1856_s23, %s1856_s23, %s1857_s27  }
  0x32   : > { %s2293_s3 = sld [smem:[#allocation18_spill]] }
  0x38   : > { %s1657_s11 = scalar_lea.hbm %s2293_s3, 512 }
  0x39   : > { %p1658_p1 = scmp.ne.s32.totalorder %s2293_s3, %s1657_s11  ;;  %p1664_p10 = scmp.lt.u32.totalorder %s1657_s11, %s2293_s3 }
  0x3b   : > { %p1660_p2 = pnand %p1658_p1, %p1967_p13 }
  0x3d   : > { %p1661_p6 = pneg %p1660_p2 }
  0x3f   : > { %p1666_p3 = pnand %p1664_p10, %p1661_p6 }
  0x41   : > { %1669 = shalt.err (!%p1666_p3)
}
  0x42   : > { %s1670_s28 = scalar_lea.vmem %s1955_s6, 512  ;;  %p1678_p12 = scmp.lt.s32.totalorder %s1955_s6, %s1955_s6 }
  0x43   : > { %p1671_p5 = scmp.ne.s32.totalorder %s1955_s6, %s1670_s28  ;;  %p1679_p0 = scmp.lt.s32.totalorder %s1670_s28, %s1670_s28 }
  0x45   : > { %p1673_p7 = pnand %p1671_p5, %p1967_p13  ;;  %p1680_p1 = por %p1679_p0, %p1678_p12 }
  0x47   : > { %p1674_p9 = pneg %p1673_p7 }
  0x49   : > { %p1681_p2 = pnand %p1680_p1, %p1674_p9 }
  0x4b   : > { %1684 = shalt.err (!%p1681_p2)
}
  0x4c   : > { %1544 = dma.hbm_to_vmem [thread:$0]  (!%p1951_p11), %s2293_s3, 512, %s1955_s6, [#allocation9], %s1856_s23, %s1856_s23, %s1857_s27  }
  0x4d   : > { %s1685_s10 = scalar_lea.hbm %s2279_s4, 512 }
  0x4e   : > { %p1686_p6 = scmp.ne.s32.totalorder %s2279_s4, %s1685_s10  ;;  %p1692_p5 = scmp.lt.u32.totalorder %s1685_s10, %s2279_s4 }
  0x50   : > { %p1688_p10 = pnand %p1686_p6, %p1967_p13 }
  0x52   : > { %p1689_p3 = pneg %p1688_p10 }
  0x54   : > { %p1694_p7 = pnand %p1692_p5, %p1689_p3 }
  0x56   : > { %1697 = shalt.err (!%p1694_p7)
}
  0x57   : > { %s1698_s16 = scalar_lea.vmem %s210_s8, 512  ;;  %p1706_p1 = scmp.lt.s32.totalorder %s210_s8, %s210_s8 }
  0x58   : > { %p1699_p9 = scmp.ne.s32.totalorder %s210_s8, %s1698_s16  ;;  %p1707_p2 = scmp.lt.s32.totalorder %s1698_s16, %s1698_s16 }
  0x5a   : > { %p1701_p12 = pnand %p1699_p9, %p1967_p13  ;;  %p1708_p4 = por %p1707_p2, %p1706_p1 }
  0x5c   : > { %p1702_p0 = pneg %p1701_p12 }
  0x5e   : > { %p1709_p8 = pnand %p1708_p4, %p1702_p0 }
  0x60   : > { %1712 = shalt.err (!%p1709_p8)
}
  0x61   : > { %1547 = dma.hbm_to_vmem [thread:$0]  (!%p1951_p11), %s2279_s4, 512, %s210_s8, [#allocation9], %s1856_s23, %s1856_s23, %s1857_s27  }
  0x62   : > { %s2040_s14 = sadd.s32 1, %s1851_s21   ;;  %s32_s17 = sadd.s32 1, %s1847_s20 }
  0x63   : > { %s29_s29 = ssub.s32 %s1851_s21, %s2040_s14  ;;  %p39_p8 = scmp.ne.s32.totalorder %s1847_s20, %s1843_s19 }
  0x64   : > { %p30_p4 = scmp.eq.s32.totalorder %s29_s29, 0  ;;  %p40_p13 = scmp.eq.s32.totalorder %s1851_s21, 0 }
  0x65   : > { %p1562_p6 = scmp.lt.s32.totalorder %s1851_s21, 2  ;;  %p2294_p3 = scmp.eq.s32.totalorder %s1921_s22, 1 }
  0x66   : > { %s2050_s30 = scalar_select %p30_p4, %s1847_s20, %s32_s17  }
  0x67   : > { %p41_p10 = por %p40_p13, %p39_p8  ;;  %p2054_p5 = por %p2294_p3, %p39_p8 }
  0x68   : > { %s223_s9 = sand.u32 1, %s1847_s20   ;;  %s1369_s10 = sshll.u32 %s1851_s21, 7 }
  0x69   : > { %s2295_s7 = scalar_select %p2054_p5, 1, 0 }
  0x6a   : > { %s2060_s8 = sshll.u32 %s223_s9, 3  ;;  %s2065_s11 = scalar_lea.hbm %s2275_s0, %s1369_s10 }
  0x6b   : > { %s227_s12 = scalar_lea.vmem [#allocation2], %s2060_s8  ;;  %p2068_p11 = pnand %p1562_p6, %p41_p10 }
  0x6c   : > { %s234_s13 = sshll.u32 %s227_s12, 4  ;;  %s2077_s28 = scalar_lea.hbm %s2276_s1, %s1369_s10  ;;  %s2072_s13 = int_to_ptr.vmem [resolvable:$true] %s234_s13 }
  0x6d   : > { %s224_s29 = scalar_lea.sflag [#allocation3], %s223_s9  ;;  %s1713_s17 = scalar_lea.hbm %s2065_s11, 128 }
  0x6e   : > { %p1714_p7 = scmp.ne.s32.totalorder %s2065_s11, %s1713_s17  ;;  %p1715_p9 = pneg %p2068_p11 }
  0x6f   : > { %s1718_s12 = scalar_lea.hbm %s2275_s0, 256  ;;  %p1719_p1 = scmp.lt.u32.totalorder %s2065_s11, %s2275_s0 }
  0x70   : > { %p1716_p12 = pnand %p1715_p9, %p1714_p7  ;;  %p1720_p2 = scmp.lt.u32.totalorder %s1718_s12, %s1713_s17 }
  0x71   : > { %p1722_p8 = scmp.lt.u32.totalorder %s1713_s17, %s2065_s11 }
  0x72   : > { %p1717_p0 = pneg %p1716_p12  ;;  %p1721_p4 = por %p1720_p2, %p1719_p1 }
  0x74   : > { %p1723_p13 = por %p1722_p8, %p1721_p4 }
  0x76   : > { %p1724_p6 = pnand %p1723_p13, %p1717_p0 }
  0x78   : > { %1727 = shalt.err (!%p1724_p6)
}
  0x79   : > { %s1728_s9 = scalar_lea.vmem %s2072_s13, 128  ;;  %s1858_s10 = smov [#allocation2]  }
  0x7a   : > { %p1729_p10 = scmp.ne.s32.totalorder %s2072_s13, %s1728_s9  ;;  %s1733_s16 = sshll.u32 %s1858_s10, 4  ;;  %s1734_s16 = int_to_ptr.vmem [resolvable:$false] %s1733_s16 }
  0x7b   : > { %s1735_s2 = scalar_lea.vmem %s1734_s16, 256  ;;  %p1736_p12 = scmp.lt.s32.totalorder %s2072_s13, %s1734_s16 }
  0x7c   : > { %p1731_p3 = pnand %p1729_p10, %p1715_p9  ;;  %p1737_p1 = scmp.lt.s32.totalorder %s1735_s2, %s1728_s9 }
  0x7e   : > { %p1732_p7 = pneg %p1731_p3  ;;  %p1738_p2 = por %p1737_p1, %p1736_p12 }
  0x80   : > { %p1739_p4 = pnand %p1738_p2, %p1732_p7 }
  0x82   : > { %1742 = shalt.err (!%p1739_p4)
}
  0x83   : > { %1551 = dma.hbm_to_vmem [thread:$0]  (!%p2068_p11), %s2065_s11, 128, %s2072_s13, %s224_s29  }
  0x84   : > { %s241_s3 = sand.u32 1, %s1851_s21   ;;  %s245_s6 = scalar_lea.vmem [#allocation5], %s2060_s8 }
  0x85   : > { %s252_s17 = sshll.u32 %s245_s6, 4  ;;  %s242_s23 = scalar_lea.sflag [#allocation6], %s241_s3  ;;  %s253_s17 = int_to_ptr.vmem [resolvable:$true] %s252_s17 }
  0x86   : > { %s1743_s27 = scalar_lea.hbm %s2077_s28, 128  ;;  %s1748_s10 = scalar_lea.hbm %s2276_s1, 256 }
  0x87   : > { %p1744_p0 = scmp.ne.s32.totalorder %s2077_s28, %s1743_s27  ;;  %p1749_p6 = scmp.lt.u32.totalorder %s2077_s28, %s2276_s1 }
  0x88   : > { %p1750_p10 = scmp.lt.u32.totalorder %s1748_s10, %s1743_s27  ;;  %p1752_p7 = scmp.lt.u32.totalorder %s1743_s27, %s2077_s28 }
  0x89   : > { %p1746_p8 = pnand %p1744_p0, %p1715_p9 }
  0x8a   : > { %p1751_p3 = por %p1750_p10, %p1749_p6 }
  0x8b   : > { %p1747_p13 = pneg %p1746_p8 }
  0x8c   : > { %p1753_p12 = por %p1752_p7, %p1751_p3 }
  0x8e   : > { %p1754_p1 = pnand %p1753_p12, %p1747_p13 }
  0x90   : > { %1757 = shalt.err (!%p1754_p1)
}
  0x91   : > { %s1758_s8 = scalar_lea.vmem %s253_s17, 128  ;;  %s1859_s11 = smov [#allocation5]  }
  0x92   : > { %p1759_p2 = scmp.ne.s32.totalorder %s253_s17, %s1758_s8  ;;  %s1763_s13 = sshll.u32 %s1859_s11, 4  ;;  %s1764_s13 = int_to_ptr.vmem [resolvable:$false] %s1763_s13 }
  0x93   : > { %s1765_s29 = scalar_lea.vmem %s1764_s13, 256  ;;  %p1766_p8 = scmp.lt.s32.totalorder %s253_s17, %s1764_s13 }
  0x94   : > { %p1761_p4 = pnand %p1759_p2, %p1715_p9  ;;  %p1767_p5 = scmp.lt.s32.totalorder %s1765_s29, %s1758_s8 }
  0x96   : > { %p1762_p0 = pneg %p1761_p4  ;;  %p1768_p6 = por %p1767_p5, %p1766_p8 }
  0x98   : > { %p1769_p10 = pnand %p1768_p6, %p1762_p0 }
  0x9a   : > { %1772 = shalt.err (!%p1769_p10)
}
  0x9b   : > { %1554 = dma.hbm_to_vmem [thread:$0]  (!%p2068_p11), %s2077_s28, 128, %s253_s17, %s242_s23  }
  0x9c   : > { %p2297_p13 = scmp.ne.s32.totalorder %s2289_s26, 0 }
  0x9d   : > { %s2128_s3 = sand.u32 (!%p2297_p13), 1, %s1843_s19   ;;  %p2298_p5 = scmp.ne.s32.totalorder (!%p2297_p13), %s2287_s24, 0 }
  0x9e   : > { %261 = sbr.rel (%p2297_p13) target bundleno = 1393 (0x571), region = 40  ;;  %s2131_s6 = sshll.u32 (!%p2297_p13), %s2128_s3, 3 }
  0x9f   : > { %s264_s27 = scalar_lea.sflag (!%p2297_p13), [#allocation3], %s2128_s3  ;;  %s267_s12 = scalar_lea.vmem (!%p2297_p13), [#allocation2], %s2131_s6 }
  0xa5   : > { %1818 = dma.done.wait (%p2298_p5), %s264_s27, 128  }
  0xa6   : > { %1820 = vsyncadd (%p2298_p5), %s264_s27, 4294967168  ;;  %s272_s26 = sand.u32 1, %s1921_s22   ;;  %s276_s28 = scalar_lea.vmem [#allocation5], %s2131_s6 }
  0xa7   : > { %s273_s15 = scalar_lea.sflag [#allocation6], %s272_s26 }
  0xa8   : > { %1822 = dma.done.wait (%p2298_p5), %s273_s15, 128  }
  0xa9   : > { %1824 = vsyncadd (%p2298_p5), %s273_s15, 4294967168  ;;  %p2299_p11 = scmp.eq.s32.totalorder %s1921_s22, 0 }
  0xab   : > { %1826 = dma.done.wait (%p2299_p11), [#allocation6], 512   ;;  %p2300_p9 = pmov %p2299_p11 }
  0xad   : > { %1828 = vsyncadd (%p2300_p9), [#allocation6], 4294966784  ;;  %p2301_p3 = pmov %p2300_p9 }
  0xaf   : > { %1830 = dma.done.wait (%p2301_p3), [#allocation9], 1024   ;;  %p2302_p7 = pmov %p2301_p3 }
  0xb0   : > { %v1860_v0 = vmov 0.0|0.0   ;;  %vm1861_vm0 = vmmov 0   ;;  %v1862_v1 = vmov 0.0   ;;  %v400_v2 = vld [vmem:[#allocation8] sm:$0xff]  ;;  %v401_v3 = vld [vmem:[#allocation8 + $0x8] sm:$0xff]  ;;  %v402_v7 = vld [vmem:[#allocation8 + $0x10] sm:$0xff] }
  0xb1   : > { %1832 = vsyncadd (%p2302_p7), [#allocation9], 4294966272  ;;  %1508 = vmatprep.subr.bf16.mxu1 %v1860_v0  ;;  %1502 = vmatprep.subr.bf16.mxu0 %v1860_v0  ;;  %v322_v4 = vld [vmem:[#allocation7] sm:$0xff]  ;;  %v1509_v5 = vpack.c.bf16 %v401_v3, %v400_v2  ;;  %v323_v6 = vld [vmem:[#allocation7 + $0x8] sm:$0xff]  ;;  %vm326_vm1 = vcmask 261120   ;;  %vm551_vm2 = vcmask 64512  }
  0xb2   : > { %1448 = vmatprep.mubr.msk.f32.mxu1 %vm1861_vm0, %v1862_v1  ;;  %1437 = vmatprep.mubr.msk.f32.mxu0 %vm1861_vm0, %v1862_v1  ;;  %v403_v8 = vld [vmem:[#allocation8 + $0x18] sm:$0xff]  ;;  %v1503_v9 = vpack.c.bf16 %v323_v6, %v322_v4  ;;  %v324_v10 = vld [vmem:[#allocation7 + $0x10] sm:$0xff]  ;;  %v320_v15 = vld [vmem:[%s267_s12] sm:$0xff]  ;;  %s1863_s24 = smov 112   ;;  %s1864_s17 = smov 120   ;;  %vm883_vm3 = vcmask 130112  }
  0xb3   : > { %v325_v11 = vld [vmem:[#allocation7 + $0x18] sm:$0xff]  ;;  %1510 = vmatpush3.bf16.msra.mxu1 %v1509_v5  ;;  %v1512_v12 = vpack.c.bf16 %v403_v8, %v402_v7  ;;  %v477_v16 = vld [vmem:[#allocation10] sm:$0xff]  ;;  %v478_v17 = vld [vmem:[#allocation10 + $0x8] sm:$0xff]  ;;  %s1865_s23 = smov 104   ;;  %s319_s9 = scalar_lea.vmem [#allocation11], %s2131_s6  ;;  %vm1054_vm4 = vcmask 195712  }
  0xb4   : > { %1504 = vmatpush3.bf16.msra.mxu0 %v1503_v9  ;;  %1511 = vmatprep.subr.bf16.mxu1 %v1860_v0  ;;  %v1506_v13 = vpack.c.bf16 %v325_v11, %v324_v10  ;;  %v321_v14 = vld [vmem:[%s276_s28] sm:$0xff]  ;;  %v1515_v19 = vpack.c.bf16 %v478_v17, %v477_v16  ;;  %s1866_s10 = smov 8   ;;  %s1867_s16 = smov 16   ;;  %vm1225_vm5 = vcmask 261312  }
  0xb5   : > { %1505 = vmatprep.subr.bf16.mxu0 %v1860_v0  ;;  %v479_v18 = vld [vmem:[#allocation10 + $0x10] sm:$0xff]  ;;  %v480_v20 = vld [vmem:[#allocation10 + $0x18] sm:$0xff]  ;;  %s1868_s2 = smov 24   ;;  %s1395_s8 = sshll.u32 %s1921_s22, 7 }
  0xb6   : > { %v1518_v21 = vpack.c.bf16 %v480_v20, %v479_v18  ;;  %s1241_s11 = sshll.u32 %s319_s9, 4  ;;  %s2231_s6 = scalar_lea.hbm %s2280_s5, %s1395_s8  ;;  %s2233_s11 = int_to_ptr.vmem [resolvable:$true] %s1241_s11 }
  0xb7   : > { %1513 = vmatpush3.bf16.msra.mxu1 %v1512_v12  ;;  %s1228_s27 = scalar_lea.sflag [#allocation4], %s2128_s3  ;;  %s1773_s12 = scalar_lea.vmem %s2233_s11, 128 }
  0xb8   : > { %1507 = vmatpush3.bf16.msra.mxu0 %v1506_v13  ;;  %1462 = vmatprep.subr.mxu1 %v1862_v1  ;;  %p1774_p12 = scmp.ne.s32.totalorder %s2233_s11, %s1773_s12  ;;  %p2303_p1 = scmp.ne.s32.totalorder %s2295_s7, 0 }
  0xb9   : > { %1514 = vmatprep.subr.bf16.mxu0 %v1860_v0  ;;  %s1869_s22 = smov [#allocation11]  }
  0xba   : > { %1449 = vmatmul.mubr.msk.f32.vlgmr.msra.gmra.mrb[0].mxu1 %vm326_vm1, %v321_v14  ;;  %p1775_p2 = pnand %p1774_p12, %p2303_p1  ;;  %s1777_s26 = sshll.u32 %s1869_s22, 4  ;;  %s1778_s26 = int_to_ptr.vmem [resolvable:$false] %s1777_s26 }
  0xbb   : > { %1438 = vmatmul.mubr.msk.f32.vlgmr.msra.gmra.mrb[0].mxu0 %vm326_vm1, %v320_v15  ;;  %1464 = vmatprep.mubr.msk.f32.mxu1 %vm1861_vm0, %v1862_v1  ;;  %s1779_s15 = scalar_lea.vmem %s1778_s26, 256  ;;  %p1780_p0 = scmp.lt.s32.totalorder %s2233_s11, %s1778_s26 }
  0xbc   : > { %1459 = vmatprep.mubr.msk.f32.mxu0 %vm1861_vm0, %v1862_v1  ;;  %1516 = vmatpush3.bf16.msra.mxu0 %v1515_v19  ;;  %p1776_p4 = pneg %p1775_p2  ;;  %p1781_p8 = scmp.lt.s32.totalorder %s1779_s15, %s1773_s12 }
  0xbd   : > { %1517 = vmatprep.subr.bf16.mxu0 %v1860_v0 }
  0xbe   : > { %p1782_p6 = por %p1781_p8, %p1780_p0 }
  0xc0   : > { %1519 = vmatpush3.bf16.msra.mxu0 %v1518_v21  ;;  %p1783_p10 = pnand %p1782_p6, %p1776_p4 }
  0xc1   : > { %1472 = vmatprep.subr.mxu0 %v1862_v1 }
  0xc3   : > { %1460 = vmatmul.mubr.msk.f32.vlgmr.msra.gmra.mrb[2].mxu0 %vm326_vm1, %v321_v14 }
  0xc4   : > { %1474 = vmatprep.mubr.msk.f32.mxu0 %vm1861_vm0, %v1862_v1 }
 0x18d   : > { %v473_v22 = vpop.f32.mrb[0].mxu1 }
 0x18e   : > { %887 = vrot.lane.b32.xlu1 %v473_v22, %s1863_s24  ;;  %715 = vrot.lane.b32.xlu0 %v473_v22, %s1864_s17  ;;  %v1450_v23 = vpop.f32.mrb[1].mxu1  ;;  %v396_v24 = vpop.f32.mrb[0].mxu0 }
 0x18f   : > { %1463 = vmatpush3.xpose.msk.msra.mxu1 %vm551_vm2, %v473_v22  ;;  %v1439_v25 = vpop.f32.mrb[1].mxu0 }
 0x190   : > { %1467 = vmatprep.subr.mxu1 %v1862_v1 }
 0x192   : > { %1465 = vmatmul.mubr.msk.f32.vlgmr.msra.gmra.mrb[2].mxu1 %vm551_vm2, %v396_v24  ;;  %885 = vrot.lane.b32.xlu1 %v396_v24, %s1863_s24 }
 0x193   : > { %713 = vrot.lane.b32.xlu0 %v396_v24, %s1864_s17  ;;  %1469 = vmatprep.mubr.msk.f32.mxu1 %vm1861_vm0, %v1862_v1 }
 0x196   : > { %1056 = vrot.lane.b32.xlu1 %v396_v24, %s1865_s23  ;;  %v2183_v26 = vpop.f32.mrb[2].mxu0 }
 0x197   : > { %1058 = vrot.lane.b32.xlu0 %v473_v22, %s1865_s23  ;;  %v1461_v27 = vpop.f32.mrb[3].mxu0  ;;  %1468 = vmatpush3.msra.mxu1 %v2183_v26 }
 0x198   : > { %1477 = vmatprep.subr.mxu1 %v1862_v1 }
 0x200   : > { %v716_v28 = vpop.permute.xlu0 %715  ;;  %v888_v29 = vpop.permute.xlu1 %887 }
 0x201   : > { %1473 = vmatpush3.xpose.msk.msra.mxu0 %vm551_vm2, %v716_v28 }
 0x202   : > { %1482 = vmatprep.subr.mxu0 %v1862_v1 }
 0x204   : > { %v886_v31 = vpop.permute.xlu1 %885 }
 0x205   : > { %v714_v30 = vpop.permute.xlu0 %713 }
 0x206   : > { %1475 = vmatmul.mubr.msk.f32.vlgmr.msra.gmra.mrb[4].mxu0 %vm551_vm2, %v714_v30 }
 0x207   : > { %1483 = vmatpush3.xpose.msk.msra.mxu0 %vm551_vm2, %v888_v29  ;;  %1484 = vmatprep.mubr.msk.f32.mxu0 %vm1861_vm0, %v1862_v1 }
 0x208   : > { %1492 = vmatprep.subr.mxu0 %v1862_v1  ;;  %v1057_v33 = vpop.permute.xlu1 %1056 }
 0x209   : > { %v1059_v32 = vpop.permute.xlu0 %1058 }
 0x20a   : > { %1485 = vmatmul.mubr.msk.f32.vlgmr.msra.gmra.mrb[6].mxu0 %vm551_vm2, %v886_v31 }
 0x20b   : > { %1493 = vmatpush3.xpose.msk.msra.mxu0 %vm551_vm2, %v1059_v32  ;;  %1494 = vmatprep.mubr.msk.f32.mxu0 %vm1861_vm0, %v1862_v1 }
 0x20e   : > { %1495 = vmatmul.mubr.msk.f32.vlgmr.msra.gmra.mrb[8].mxu0 %vm551_vm2, %v1057_v33 }
 0x265   : > { %v624_v34 = vpop.f32.mrb[2].mxu1 }
 0x266   : > { %v1466_v35 = vpop.f32.mrb[3].mxu1  ;;  %v628_v36 = vsel %vm551_vm2, %v624_v34, -inf }
 0x267   : > { %629 = vmax.xlane.f32.xlu0 %v628_v36 }
 0x2d9   : > { %v787_v37 = vpop.f32.mrb[4].mxu0 }
 0x2da   : > { %v1476_v38 = vpop.f32.mrb[5].mxu0  ;;  %v791_v39 = vsel %vm551_vm2, %v787_v37, -inf }
 0x2db   : > { %792 = vmax.xlane.f32.xlu1 %v791_v39 }
 0x2dd   : > { %v959_v40 = vpop.f32.mrb[6].mxu0 }
 0x2de   : > { %v1486_v41 = vpop.f32.mrb[7].mxu0  ;;  %v963_v42 = vsel %vm551_vm2, %v959_v40, -inf }
 0x2df   : > { %964 = vmax.xlane.f32.xlu0 %v963_v42 }
 0x2e1   : > { %v1130_v43 = vpop.f32.mrb[8].mxu0 }
 0x2e2   : > { %v1496_v44 = vpop.f32.mrb[9].mxu0  ;;  %v1134_v45 = vsel %vm551_vm2, %v1130_v43, -inf }
 0x2e3   : > { %1135 = vmax.xlane.f32.xlu0 %v1134_v45 }
 0x2ec   : > { %803 = vrot.lane.b32.xlu1 %v2183_v26, %s1864_s17 }
 0x2f4   : > { %v630_v46 = vpop.xlane.xlu0 %629 }
 0x2f5   : > { %v631_v47 = vsub.f32 %v624_v34, %v630_v46 }
 0x2f7   : > { %v632_v48 = vmul.f32 1.442695, %v631_v47 }
 0x2f9   : > { %1613 = vpow2.f32 %v632_v48 }
 0x303   : > { %v1614_v49 = vpop.eup %1613 }
 0x304   : > { %v634_v50 = vsel %vm551_vm2, %v1614_v49, 0.0 }
 0x310   : > { %635 = vadd.xlane.f32.xlu1 %v634_v50 }
 0x368   : > { %v793_v51 = vpop.xlane.xlu1 %792 }
 0x369   : > { %v794_v52 = vsub.f32 %v787_v37, %v793_v51 }
 0x36b   : > { %v795_v53 = vmul.f32 1.442695, %v794_v52 }
 0x36c   : > { %v965_v54 = vpop.xlane.xlu0 %964  ;;  %v804_v3 = vpop.permute.xlu1 %803 }
 0x36d   : > { %1615 = vpow2.f32 %v795_v53  ;;  %v966_v55 = vsub.f32 %v959_v40, %v965_v54 }
 0x36f   : > { %v967_v56 = vmul.f32 1.442695, %v966_v55 }
 0x370   : > { %v1136_v57 = vpop.xlane.xlu0 %1135 }
 0x371   : > { %1617 = vpow2.f32 %v967_v56  ;;  %v1137_v58 = vsub.f32 %v1130_v43, %v1136_v57 }
 0x373   : > { %v1138_v59 = vmul.f32 1.442695, %v1137_v58 }
 0x375   : > { %1619 = vpow2.f32 %v1138_v59 }
 0x377   : > { %v1616_v60 = vpop.eup %1615 }
 0x378   : > { %v797_v61 = vsel %vm551_vm2, %v1616_v60, 0.0 }
 0x379   : > { %798 = vadd.xlane.f32.xlu0 %v797_v61 }
 0x37b   : > { %v1618_v62 = vpop.eup %1617 }
 0x37c   : > { %v969_v63 = vsel %vm551_vm2, %v1618_v62, 0.0 }
 0x37d   : > { %970 = vadd.xlane.f32.xlu1 %v969_v63 }
 0x37f   : > { %v1620_v0 = vpop.eup %1619 }
 0x380   : > { %v1140_v2 = vsel %vm551_vm2, %v1620_v0, 0.0 }
 0x381   : > { %1141 = vadd.xlane.f32.xlu0 %v1140_v2 }
 0x38e   : > { %1145 = vrot.lane.b32.xlu1 %v2183_v26, %s1865_s23 }
 0x397   : > { %974 = vrot.lane.b32.xlu0 %v2183_v26, %s1863_s24 }
 0x39d   : > { %v636_v4 = vpop.xlane.xlu1 %635 }
 0x39e   : > { %1621 = vrcp.f32 %v636_v4 }
 0x3a8   : > { %v1622_v5 = vpop.eup %1621 }
 0x3a9   : > { %v638_v6 = vmul.f32 %v1622_v5, %v1614_v49 }
 0x3ab   : > { %1470 = vmatmul.mubr.msk.f32.vlgmr.msra.gmra.mrb[4].mxu1 %vm551_vm2, %v638_v6 }
 0x3ac   : > { %1478 = vmatpush3.msra.mxu1 %v804_v3  ;;  %1479 = vmatprep.mubr.msk.f32.mxu1 %vm1861_vm0, %v1862_v1 }
 0x3ad   : > { %1487 = vmatprep.subr.mxu1 %v1862_v1 }
 0x406   : > { %v799_v7 = vpop.xlane.xlu0 %798 }
 0x407   : > { %1623 = vrcp.f32 %v799_v7 }
 0x40a   : > { %v971_v8 = vpop.xlane.xlu1 %970 }
 0x40b   : > { %1625 = vrcp.f32 %v971_v8 }
 0x40e   : > { %v1142_v9 = vpop.xlane.xlu0 %1141  ;;  %v1146_v15 = vpop.permute.xlu1 %1145 }
 0x40f   : > { %1627 = vrcp.f32 %v1142_v9 }
 0x411   : > { %v1624_v10 = vpop.eup %1623 }
 0x412   : > { %v801_v11 = vmul.f32 %v1624_v10, %v1616_v60  ;;  %v975_v12 = vpop.permute.xlu0 %974 }
 0x414   : > { %1480 = vmatmul.mubr.msk.f32.vlgmr.msra.gmra.mrb[6].mxu1 %vm551_vm2, %v801_v11 }
 0x415   : > { %v1626_v13 = vpop.eup %1625  ;;  %1488 = vmatpush3.msra.mxu1 %v975_v12  ;;  %1489 = vmatprep.mubr.msk.f32.mxu1 %vm1861_vm0, %v1862_v1 }
 0x416   : > { %v973_v14 = vmul.f32 %v1626_v13, %v1618_v62  ;;  %1497 = vmatprep.subr.mxu1 %v1862_v1 }
 0x418   : > { %1490 = vmatmul.mubr.msk.f32.vlgmr.msra.gmra.mrb[8].mxu1 %vm551_vm2, %v973_v14 }
 0x419   : > { %v1628_v16 = vpop.eup %1627  ;;  %1498 = vmatpush3.msra.mxu1 %v1146_v15  ;;  %1499 = vmatprep.mubr.msk.f32.mxu1 %vm1861_vm0, %v1862_v1 }
 0x41a   : > { %v1144_v17 = vmul.f32 %v1628_v16, %v1620_v0 }
 0x41c   : > { %1500 = vmatmul.mubr.msk.f32.vlgmr.msra.gmra.mrb[10].mxu1 %vm551_vm2, %v1144_v17 }
 0x47e   : > { %v708_v18 = vpop.f32.mrb[4].mxu1 }
 0x47f   : > { %712 = vst.msk [vmem:[%s319_s9] sm:$0xff] %vm551_vm2, %v708_v18  ;;  %v1471_v19 = vpop.f32.mrb[5].mxu1 }
 0x4e7   : > { %v875_v20 = vpop.f32.mrb[6].mxu1 }
 0x4e8   : > { %880 = vrot.lane.b32.xlu1 %v875_v20, %s1866_s10  ;;  %v1481_v21 = vpop.f32.mrb[7].mxu1 }
 0x4eb   : > { %v1046_v22 = vpop.f32.mrb[8].mxu1 }
 0x4ec   : > { %1051 = vrot.lane.b32.xlu0 %v1046_v22, %s1867_s16  ;;  %v1491_v23 = vpop.f32.mrb[9].mxu1 }
 0x4ef   : > { %v1217_v24 = vpop.f32.mrb[10].mxu1 }
 0x4f0   : > { %1222 = vrot.lane.b32.xlu1 %v1217_v24, %s1868_s2  ;;  %v1501_v1 = vpop.f32.mrb[11].mxu1 }
 0x55a   : > { %v881_v25 = vpop.permute.xlu1 %880 }
 0x55b   : > { %884 = vst.msk [vmem:[%s319_s9] sm:$0xff] %vm883_vm3, %v881_v25 }
 0x55e   : > { %v1052_v26 = vpop.permute.xlu0 %1051 }
 0x55f   : > { %1055 = vst.msk [vmem:[%s319_s9] sm:$0xff] %vm1054_vm4, %v1052_v26 }
 0x562   : > { %v1223_v27 = vpop.permute.xlu1 %1222 }
 0x563   : > { %1226 = vst.msk [vmem:[%s319_s9] sm:$0xff] %vm1225_vm5, %v1223_v27 }
 0x564   : > { %1786 = shalt.err (!%p1783_p10)
}
 0x565   : > { %s1787_s3 = scalar_lea.hbm %s2231_s6, 128  ;;  %s1791_s17 = scalar_lea.hbm %s2280_s5, 256 }
 0x566   : > { %p1788_p13 = scmp.ne.s32.totalorder %s2231_s6, %s1787_s3  ;;  %p1792_p9 = scmp.lt.u32.totalorder %s2231_s6, %s2280_s5 }
 0x567   : > { %p1793_p3 = scmp.lt.u32.totalorder %s1791_s17, %s1787_s3  ;;  %p1795_p12 = scmp.lt.u32.totalorder %s1787_s3, %s2231_s6 }
 0x568   : > { %p1789_p5 = pnand %p1788_p13, %p2303_p1 }
 0x569   : > { %p1794_p7 = por %p1793_p3, %p1792_p9 }
 0x56a   : > { %p1790_p11 = pneg %p1789_p5 }
 0x56b   : > { %p1796_p2 = por %p1795_p12, %p1794_p7 }
 0x56d   : > { %p1797_p4 = pnand %p1796_p2, %p1790_p11 }
 0x56f   : > { %1800 = shalt.err (!%p1797_p4)
}
 0x570   : > { %1536 = dma.vmem_to_hbm [thread:$0]  (%p2303_p1), %s2233_s11, 128, %s2231_s6, %s1228_s27  }
 0x571 PF: > { %s1253_s10 = sand.u32 1, %s1839_s18   ;;  %p2304_p0 = scmp.ne.s32.totalorder %s2288_s25, 0 }
 0x572   : > { %p2305_p8 = scmp.ge.s32.totalorder %s1851_s21, 2  ;;  %s1254_s16 = scalar_lea.sflag [#allocation4], %s1253_s10 }
 0x574   : > { %p1556_p6 = pnand %p2305_p8, %p2304_p0 }
 0x576   : > { %1834 = dma.done.wait (!%p1556_p6), %s1254_s16, 128  }
 0x577   : > { %1836 = vsyncadd (!%p1556_p6), %s1254_s16, 4294967168  ;;  %p22_p10 = scmp.ge.s32.totalorder %s2040_s14, 4   ;;  %s2306_s18 = smov %s1843_s19 }
 0x578   : > { %s2307_s19 = smov %s1847_s20  ;;  %s2308_s20 = smov %s2050_s30 }
 0x579   : > { %s2309_s21 = smov %s2040_s14  ;;  %24 = sbr.rel (!%p22_p10) target bundleno = 11 (0xb), region = 110 }
 0x580   :  { %1259 = vsyncpa [#allocation3], 1 }
 0x581   :  { %1261 = vsyncpa [#allocation3 + $0x1], 1 }
 0x582   :  { %1262 = vsyncpa [#allocation6], 1 }
 0x583   :  { %1264 = vsyncpa [#allocation6 + $0x1], 1 }
 0x584   :  { %1265 = vsyncpa [#allocation9], 1 }
 0x585   :  { %1266 = vsyncpa [#allocation4], 1 }
 0x586   :  { %1268 = vsyncpa [#allocation4 + $0x1], 1 }

</bundles_post_ra>
